<compile_context>
chip_gen: v5e
topology: v5e:2x2
jax: 0.10.0
libtpu: 0.0.40
codegen_flags: <defaults>
</compile_context>

<pallas_src>
import math

import jax
import jax.numpy as jnp
from jax import lax
from jax.experimental import pallas as pl
from jax.experimental.pallas import tpu as pltpu

_NEG = -1e30  # finite "minus infinity" for the running max / mask bias


def _round_up(v, m):
    return -(-v // m) * m


def _pick_tile(BS, tm_target):
    """Pick the point-tile size: prefer >=2 grid steps and <=12.5% padded rows, then big tiles."""
    tm_target = max(8, _round_up(tm_target, 8))
    cands, t = [], tm_target
    while t > 8:
        cands.append(t)
        t = max(8, t // 2)
    cands.append(8)
    best_t, best_key = 8, None
    for t in cands:
        bs_pad = _round_up(BS, t)
        steps = bs_pad // t
        waste = (bs_pad - BS) / bs_pad
        key = (steps < 2, waste > 0.125, -t)
        if best_key is None or key < best_key:
            best_key, best_t = key, t
    return best_t, _round_up(BS, best_t)


# ----------------------------- Pallas kernel -------------------------------- #
def _point_conv_kernel(counts_ref, feats_ref, w1_ref, w2_ref, out_ref):
    # counts_ref: (tm, 1) int32        feats_ref: (tm, Kc, cin_pad) bf16
    # w1_ref: (cin_pad, H_pad) bf16    w2_ref: (H_pad, O_pad) bf16 (biases folded in)
    # out_ref: (tm, O_pad) f32  -- resident accumulator across the kc grid axis
    kc = pl.program_id(1)
    tm, Kc, cin_pad = feats_ref.shape
    o_pad = out_ref.shape[1]

    @pl.when(kc == 0)
    def _():
        out_ref[...] = jnp.full(out_ref.shape, _NEG, out_ref.dtype)

    # Kc=16 matches the bf16 sublane packing, so this reshape is tile-aligned.
    f = feats_ref[...].reshape(tm * Kc, cin_pad)
    h1 = jnp.dot(f, w1_ref[...], preferred_element_type=jnp.float32)        # b1 folded in w1
    h1 = jnp.maximum(h1, 0.0).astype(w1_ref.dtype)                          # ReLU, bf16 -> MXU
    h2 = jnp.dot(h1, w2_ref[...], preferred_element_type=jnp.float32)       # b2 folded in w2

    # Validity is a prefix of the K axis (see radius_group); rebuild the 0 / -1e30 bias
    # in-kernel from the per-point count instead of reading a (BS, K) f32 tensor from HBM.
    nbr = lax.broadcasted_iota(jnp.int32, (tm, Kc), 1) + kc * Kc
    bias = jnp.where(nbr < counts_ref[...], 0.0, _NEG)                       # (tm, Kc)

    h2 = h2.reshape(tm, Kc, o_pad) + bias[:, :, None]
    out_ref[...] = jnp.maximum(out_ref[...], jnp.max(h2, axis=1))            # running max


def _prepare(feats, counts, w1, b1, w2, b2, tm_target):
    """Pad channels / rows / K, fold biases into the padded weights, cast to bf16."""
    BS, K, cin = feats.shape
    H = w1.shape[1]
    O = w2.shape[1]

    cin_pad = _round_up(cin + 1, 8)     # +1 constant-one input channel (carries b1 / b2 pivot)
    H_pad = _round_up(H + 1, 128)       # +1 constant-one hidden column (carries b2); lane-dense
    O_pad = _round_up(O, 128)           # lane-dense output (unmasked vst)
    Kc = 16 if K > 8 else 8             # neighbor chunk, bf16 sublane-pack aligned
    K_pad = _round_up(K, Kc)
    tm, BS_pad = _pick_tile(BS, tm_target)

    ones_in = cin                        # constant-1 input channel index
    ones_hid = H                         # constant-1 hidden column index

    # edge features: pad channels, set ones channel, pad K / BS, cast bf16
    f = jnp.pad(feats, ((0, 0), (0, 0), (0, cin_pad - cin)))
    f = f.at[:, :, ones_in].set(1.0)
    f = jnp.pad(f, ((0, BS_pad - BS), (0, K_pad - K), (0, 0)))
    feats_p = f.astype(jnp.bfloat16)

    counts_p = jnp.pad(counts.astype(jnp.int32).reshape(BS, 1), ((0, BS_pad - BS), (0, 0)))

    # fold b1 / b2 into the zero-padded weights
    w1p = jnp.zeros((cin_pad, H_pad), jnp.float32)
    w1p = w1p.at[:cin, :H].set(w1)
    w1p = w1p.at[ones_in, :H].set(b1)          # +b1 via the constant-1 input channel
    w1p = w1p.at[ones_in, ones_hid].set(1.0)   # keep a constant-1 hidden column alive
    w2p = jnp.zeros((H_pad, O_pad), jnp.float32)
    w2p = w2p.at[:H, :O].set(w2)
    w2p = w2p.at[ones_hid, :O].set(b2)         # +b2 via the constant-1 hidden column

    return (feats_p, counts_p, w1p.astype(jnp.bfloat16), w2p.astype(jnp.bfloat16),
            tm, Kc, BS_pad, K_pad, cin_pad, H_pad, O_pad)


def point_conv_pallas(feats, counts, w1, b1, w2, b2, *, tm_target=256):
    """feats: (BS, K, Cin) f32, counts: (BS,) int32 -> (BS, Cout) f32."""
    BS = feats.shape[0]
    O = w2.shape[1]
    (feats_p, counts_p, w1p, w2p,
     tm, Kc, BS_pad, K_pad, cin_pad, H_pad, O_pad) = _prepare(
        feats, counts, w1, b1, w2, b2, tm_target)

    out = pl.pallas_call(
        _point_conv_kernel,
        out_shape=jax.ShapeDtypeStruct((BS_pad, O_pad), jnp.float32),
        grid_spec=pltpu.PrefetchScalarGridSpec(
            num_scalar_prefetch=0,
            grid=(BS_pad // tm, K_pad // Kc),                          # (points, K-chunks)
            in_specs=[
                pl.BlockSpec((tm, 1), lambda i, k: (i, 0)),            # per-point valid count
                pl.BlockSpec((tm, Kc, cin_pad), lambda i, k: (i, k, 0)),  # edge-feature chunk
                pl.BlockSpec((cin_pad, H_pad), lambda i, k: (0, 0)),   # W1 (+b1), resident
                pl.BlockSpec((H_pad, O_pad), lambda i, k: (0, 0)),     # W2 (+b2), resident
            ],
            out_specs=pl.BlockSpec((tm, O_pad), lambda i, k: (i, 0)),  # accumulator (revisited
        ),                                                             # only along the kc axis)
        compiler_params=pltpu.CompilerParams(
            # point axis splits across TensorCores (v7x megacore); kc is the reduction.
            dimension_semantics=("parallel", "arbitrary"),
            # chunked restructure keeps the working set well under 32 MiB on v5e/v6e/v7x.
            vmem_limit_bytes=32 * 1024 * 1024,
        ),
    )(counts_p, feats_p, w1p, w2p)

    return out[:BS, :O]


def point_conv_reference(feats, counts, w1, b1, w2, b2, *, tm_target=256):
    """Pure-JAX mirror of the kernel math (same padding / bias folding / bf16 rounding)."""
    BS = feats.shape[0]
    O = w2.shape[1]
    (feats_p, counts_p, w1p, w2p,
     tm, Kc, BS_pad, K_pad, cin_pad, H_pad, O_pad) = _prepare(
        feats, counts, w1, b1, w2, b2, tm_target)

    f = feats_p.astype(jnp.float32).reshape(BS_pad * K_pad, cin_pad)
    h1 = jnp.maximum(f @ w1p.astype(jnp.float32), 0.0)
    h1 = h1.astype(jnp.bfloat16).astype(jnp.float32)
    h2 = (h1 @ w2p.astype(jnp.float32)).reshape(BS_pad, K_pad, O_pad)
    k_iota = jnp.arange(K_pad, dtype=jnp.int32)[None, :]
    bias = jnp.where(k_iota < counts_p, 0.0, _NEG)                      # (BS_pad, K_pad)
    out = jnp.max(h2 + bias[:, :, None], axis=1)
    return out[:BS, :O]


# ------------------------------ JAX glue ------------------------------------ #
def fps(pos, num_samples):
    """Farthest point sampling on one cloud. pos: (N, 3) -> idx (num_samples,)."""
    N = pos.shape[0]

    def body(i, carry):
        idx, mind = carry
        last = pos[idx[i - 1]]
        d = jnp.sum((pos - last) ** 2, axis=-1)
        mind = jnp.minimum(mind, d)
        nxt = jnp.argmax(mind).astype(jnp.int32)
        idx = idx.at[i].set(nxt)
        return idx, mind

    idx0 = jnp.zeros((num_samples,), jnp.int32)  # deterministic start at point 0
    mind0 = jnp.full((N,), jnp.inf, jnp.float32)
    idx, _ = lax.fori_loop(1, num_samples, body, (idx0, mind0))
    return idx


def radius_group(pos, pos_sampled, r, K):
    """First K in-radius neighbor indices per sampled point (index order) + valid count.

    Valid slots are guaranteed to be a PREFIX of the K slots: valid keys (< N) always sort
    before invalid keys (>= N), so slot k is valid iff k < count.  The kernel relies on this.
    """
    N = pos.shape[0]
    d2 = jnp.sum((pos_sampled[:, None, :] - pos[None, :, :]) ** 2, axis=-1)  # (S, N)
    in_r = d2 <= r * r
    ar = jnp.arange(N, dtype=jnp.int32)[None, :]
    key = jnp.where(in_r, ar, ar + N)            # valid neighbors sort first, index order
    _, order = lax.top_k(-key, K)                # K smallest keys
    counts = jnp.minimum(jnp.sum(in_r, axis=-1), K).astype(jnp.int32)
    return order.astype(jnp.int32), counts


def build_groups(x, pos, ratio, r, max_num_neighbors):
    """fps + radius + per-edge feature gather. Returns (BS,K,C+3) feats and (BS,) counts."""
    B, N, C = x.shape
    S = int(math.ceil(ratio * N))
    K = min(max_num_neighbors, N)

    idx = jax.vmap(lambda p: fps(p, S))(pos)                               # (B, S)
    pos_sampled = jnp.take_along_axis(pos, idx[..., None], axis=1)         # (B, S, 3)
    nbr_idx, counts = jax.vmap(lambda p, ps: radius_group(p, ps, r, K))(pos, pos_sampled)

    x_nbr = jax.vmap(lambda xb, ib: xb[ib])(x, nbr_idx)                    # (B, S, K, C)
    pos_nbr = jax.vmap(lambda pb, ib: pb[ib])(pos, nbr_idx)                # (B, S, K, 3)
    rel = pos_nbr - pos_sampled[:, :, None, :]
    feats = jnp.concatenate([x_nbr, rel], axis=-1).astype(jnp.float32)     # (B, S, K, C+3)

    return feats.reshape(B * S, K, C + 3), counts.reshape(B * S), pos_sampled, B, S


def point_sa_module(x, pos, *, ratio, r, w1, b1, w2, b2, max_num_neighbors=64, tm_target=256):
    """x: (B, N, C), pos: (B, N, 3) -> (x_out (B*S, O), pos_out (B*S, 3), batch (B*S,))."""
    feats, counts, pos_sampled, B, S = build_groups(x, pos, ratio, r, max_num_neighbors)
    x_out = point_conv_pallas(feats, counts, w1, b1, w2, b2, tm_target=tm_target)
    pos_out = pos_sampled.reshape(B * S, 3)
    batch_out = jnp.repeat(jnp.arange(B, dtype=jnp.int32), S)
    return x_out, pos_out, batch_out


# -------------------------------- main --------------------------------------- #
if __name__ == "__main__":
    B, N, C = 2, 16, 4          # 2 clouds of 16 points, 4 input feature channels
    RATIO, R = 0.5, 0.6         # sample 8 points / cloud, radius 0.6 in the unit cube
    H, O = 32, 32               # local_nn = Seq(Lin(C+3, 32), ReLU, Lin(32, 32))
    K_MAX = 64

    key = jax.random.PRNGKey(0)
    kx, kp, k1, k2, kb1, kb2 = jax.random.split(key, 6)
    x = jax.random.normal(kx, (B, N, C), dtype=jnp.float32)
    pos = jax.random.uniform(kp, (B, N, 3), dtype=jnp.float32)

    w1 = jax.random.normal(k1, (C + 3, H), dtype=jnp.float32) * (1.0 / math.sqrt(C + 3))
    b1 = jax.random.normal(kb1, (H,), dtype=jnp.float32) * 0.1
    w2 = jax.random.normal(k2, (H, O), dtype=jnp.float32) * (1.0 / math.sqrt(H))
    b2 = jax.random.normal(kb2, (O,), dtype=jnp.float32) * 0.1

    x_out, pos_out, batch_out = point_sa_module(
        x, pos, ratio=RATIO, r=R, w1=w1, b1=b1, w2=w2, b2=b2, max_num_neighbors=K_MAX)
    jax.block_until_ready((x_out, pos_out, batch_out))

    # Cross-check the Pallas hot path against a pure-JAX reference on identical groups / math.
    feats, counts, _, _, _ = build_groups(x, pos, RATIO, R, K_MAX)
    got = point_conv_pallas(feats, counts, w1, b1, w2, b2)
    ref = point_conv_reference(feats, counts, w1, b1, w2, b2)
    jax.block_until_ready((got, ref))
    assert jnp.allclose(got, ref, atol=1e-2, rtol=1e-2), "Pallas/ref mismatch"

    S = int(math.ceil(RATIO * N))
    assert x_out.shape == (B * S, O) and pos_out.shape == (B * S, 3)
    assert batch_out.shape == (B * S,)
    print("KERNEL_OK")
</pallas_src>

<mosaic_0001>
module attributes {stable_mosaic.version = 11 : i64} {
  func.func @_point_conv_kernel(%arg0: i32, %arg1: i32, %arg2: memref<8x1xi32, #tpu.memory_space<vmem>>, %arg3: memref<8x16x8xbf16, #tpu.memory_space<vmem>>, %arg4: memref<8x128xbf16, #tpu.memory_space<vmem>>, %arg5: memref<128x128xbf16, #tpu.memory_space<vmem>>, %arg6: memref<8x128xf32, #tpu.memory_space<vmem>>) attributes {dimension_semantics = [#tpu.dimension_semantics<parallel>, #tpu.dimension_semantics<arbitrary>], iteration_bounds = array<i64: 2, 1>, scalar_prefetch = 0 : i64, scratch_operands = 0 : i64, tpu.core_type = #tpu.core_type<tc>, window_params = [{transform_indices = @transform_0, window_bounds = array<i64: 8, 1>}, {transform_indices = @transform_1, window_bounds = array<i64: 8, 16, 8>}, {pipeline_mode = #tpu.pipeline_mode<synchronous>, transform_indices = @transform_2, window_bounds = array<i64: 8, 128>}, {pipeline_mode = #tpu.pipeline_mode<synchronous>, transform_indices = @transform_3, window_bounds = array<i64: 128, 128>}, {transform_indices = @transform_4, window_bounds = array<i64: 8, 128>}]} {
    %c0_i32 = arith.constant 0 : i32
    %0 = arith.cmpi eq, %arg1, %c0_i32 : i32
    %1 = arith.extui %0 : i1 to i32
    %c0_i32_0 = arith.constant 0 : i32
    %2 = arith.cmpi ne, %1, %c0_i32_0 : i32
    scf.if %2 {
      %cst_18 = arith.constant -1.000000e+30 : f32
      %30 = vector.broadcast %cst_18 : f32 to vector<8x128xf32>
      %c0_19 = arith.constant 0 : index
      %c0_20 = arith.constant 0 : index
      %31 = vector.load %arg6[%c0_19, %c0_20] : memref<8x128xf32, #tpu.memory_space<vmem>>, vector<8x128xf32>
      tpu.vector_store %arg6[%c0_19, %c0_20], %30 {strides = array<i32>} : memref<8x128xf32, #tpu.memory_space<vmem>>, vector<8x128xf32>,
    } else {
    }
    %c0 = arith.constant 0 : index
    %c0_1 = arith.constant 0 : index
    %c0_2 = arith.constant 0 : index
    %3 = vector.load %arg3[%c0, %c0_1, %c0_2] : memref<8x16x8xbf16, #tpu.memory_space<vmem>>, vector<8x16x8xbf16>
    %4 = vector.shape_cast %3 : vector<8x16x8xbf16> to vector<128x8xbf16>
    %c0_3 = arith.constant 0 : index
    %c0_4 = arith.constant 0 : index
    %5 = vector.load %arg4[%c0_3, %c0_4] : memref<8x128xbf16, #tpu.memory_space<vmem>>, vector<8x128xbf16>
    %cst = arith.constant dense<0.000000e+00> : vector<128x128xf32>
    %6 = tpu.matmul %4, %5, %cst {dimension_numbers = #tpu.dot_dimension_numbers<[1], [0], [0], [1], [0, 0, 1, 1], [], []>} : vector<128x8xbf16>, vector<8x128xbf16>, vector<128x128xf32> -> vector<128x128xf32>
    %cst_5 = arith.constant 0.000000e+00 : f32
    %7 = vector.broadcast %cst_5 : f32 to vector<128x128xf32>
    %8 = arith.maximumf %6, %7 : vector<128x128xf32>
    %9 = arith.truncf %8 : vector<128x128xf32> to vector<128x128xbf16>
    %c0_6 = arith.constant 0 : index
    %c0_7 = arith.constant 0 : index
    %10 = vector.load %arg5[%c0_6, %c0_7] : memref<128x128xbf16, #tpu.memory_space<vmem>>, vector<128x128xbf16>
    %cst_8 = arith.constant dense<0.000000e+00> : vector<128x128xf32>
    %11 = tpu.matmul %9, %10, %cst_8 {dimension_numbers = #tpu.dot_dimension_numbers<[1], [0], [0], [1], [0, 0, 1, 1], [], []>} : vector<128x128xbf16>, vector<128x128xbf16>, vector<128x128xf32> -> vector<128x128xf32>
    %12 = tpu.iota {dimensions = array<i32: 1>} : vector<8x16xi32>
    %c16_i32 = arith.constant 16 : i32
    %13 = arith.muli %arg1, %c16_i32 : i32
    %14 = vector.broadcast %13 : i32 to vector<8x16xi32>
    %15 = arith.addi %12, %14 : vector<8x16xi32>
    %c0_9 = arith.constant 0 : index
    %c0_10 = arith.constant 0 : index
    %16 = vector.load %arg2[%c0_9, %c0_10] : memref<8x1xi32, #tpu.memory_space<vmem>>, vector<8x1xi32>
    %17 = vector.broadcast %16 : vector<8x1xi32> to vector<8x16xi32>
    %18 = arith.cmpi slt, %15, %17 : vector<8x16xi32>
    %cst_11 = arith.constant 0.000000e+00 : f32
    %cst_12 = arith.constant -1.000000e+30 : f32
    %19 = vector.broadcast %cst_11 : f32 to vector<8x16xf32>
    %20 = vector.broadcast %cst_12 : f32 to vector<8x16xf32>
    %21 = arith.select %18, %19, %20 : vector<8x16xi1>, vector<8x16xf32>
    %22 = vector.shape_cast %11 : vector<128x128xf32> to vector<8x16x128xf32>
    %23 = vector.shape_cast %21 : vector<8x16xf32> to vector<8x16x1xf32>
    %24 = vector.broadcast %23 : vector<8x16x1xf32> to vector<8x16x128xf32>
    %25 = arith.addf %22, %24 : vector<8x16x128xf32>
    %c0_13 = arith.constant 0 : index
    %c0_14 = arith.constant 0 : index
    %26 = vector.load %arg6[%c0_13, %c0_14] : memref<8x128xf32, #tpu.memory_space<vmem>>, vector<8x128xf32>
    %cst_15 = arith.constant dense<0xFF800000> : vector<8x128xf32>
    %27 = vector.multi_reduction <maximumf>, %25, %cst_15 [1] : vector<8x16x128xf32> to vector<8x128xf32>
    %28 = arith.maximumf %26, %27 : vector<8x128xf32>
    %c0_16 = arith.constant 0 : index
    %c0_17 = arith.constant 0 : index
    %29 = vector.load %arg6[%c0_16, %c0_17] : memref<8x128xf32, #tpu.memory_space<vmem>>, vector<8x128xf32>
    tpu.vector_store %arg6[%c0_16, %c0_17], %28 {strides = array<i32>} : memref<8x128xf32, #tpu.memory_space<vmem>>, vector<8x128xf32>,
    return
  }
  func.func @transform_0(%arg0: i32, %arg1: i32) -> (i32, i32) {
    %c0_i32 = arith.constant 0 : i32
    %c0_i32_0 = arith.constant 0 : i32
    return %arg0, %c0_i32 : i32, i32
  }
  func.func @transform_1(%arg0: i32, %arg1: i32) -> (i32, i32, i32) {
    %c0_i32 = arith.constant 0 : i32
    %c0_i32_0 = arith.constant 0 : i32
    return %arg0, %arg1, %c0_i32 : i32, i32, i32
  }
  func.func @transform_2(%arg0: i32, %arg1: i32) -> (i32, i32) {
    %c0_i32 = arith.constant 0 : i32
    %c0_i32_0 = arith.constant 0 : i32
    %c0_i32_1 = arith.constant 0 : i32
    return %c0_i32, %c0_i32_0 : i32, i32
  }
  func.func @transform_3(%arg0: i32, %arg1: i32) -> (i32, i32) {
    %c0_i32 = arith.constant 0 : i32
    %c0_i32_0 = arith.constant 0 : i32
    %c0_i32_1 = arith.constant 0 : i32
    return %c0_i32, %c0_i32_0 : i32, i32
  }
  func.func @transform_4(%arg0: i32, %arg1: i32) -> (i32, i32) {
    %c0_i32 = arith.constant 0 : i32
    %c0_i32_0 = arith.constant 0 : i32
    return %arg0, %c0_i32 : i32, i32
  }
}

</mosaic_0001>

<bundles_post_ra>
// kernel: tpu_custom_call.1
= control target key start
LH: loop header
LB: loop body
LE: loop exit
PB: predicated region body
PF: predicated region fallthrough
CT: control target
= control target key end

     0   :  { %9 = vsyncpa [#allocation3], 0  ;;  %s1293_s0 = inlined_call_operand.vmem [shape: s32[16,1], index: 0, kind: input, shape index: {}]   ;;  %s1294_s1 = inlined_call_operand.vmem [shape: bf16[16,16,8], index: 1, kind: input, shape index: {}]   ;;  %s1295_s2 = inlined_call_operand.vmem [shape: bf16[8,128], index: 2, kind: input, shape index: {}]   ;;  %s1296_s3 = inlined_call_operand.vmem [shape: bf16[128,128], index: 3, kind: input, shape index: {}]   ;;  %s1297_s4 = inlined_call_operand.hbm [shape: f32[16,128], index: 4, kind: output, shape index: {}]  }
   0x1   :  { %11 = vsyncpa [#allocation3 + $0x1], 0  ;;  %s1128_s15 = smov 0   ;;  %s1130_s16 = smov 0  }
   0x2   :  { %s1132_s17 = smov 0   ;;  %s1134_s18 = smov 0  }
   0x3   :  { %s1136_s19 = smov 0   ;;  %s1138_s20 = smov 0  }
   0x4 LB: > { %s838_s21 = sadd.s32 4294967295, %s1099_s20   ;;  %s839_s22 = sadd.s32 4294967294, %s1099_s20   ;;  %s1099_s20 = sphi %s1138_s20, %s17_s20   ;;  %s1095_s19 = sphi %s1136_s19, %s1304_s19   ;;  %s1091_s18 = sphi %s1134_s18, %s1303_s18   ;;  %s1087_s17 = sphi %s1132_s17, %s1302_s17   ;;  %s1083_s16 = sphi %s1130_s16, %s1301_s16   ;;  %s1079_s15 = sphi %s1128_s15, %s1300_s15  }
   0x5   : > { %s29_s23 = sadd.s32 1, %s1095_s19  ;;  %s132_s24 = sadd.s32 1, %s1087_s17 }
   0x6   : > { %p31_p0 = scmp.ge.s32.totalorder %s29_s23, 2  ;;  %p142_p1 = scmp.ne.s32.totalorder %s1087_s17, %s1083_s16 }
   0x7   : > { %p143_p2 = scmp.eq.s32.totalorder %s838_s21, 1  ;;  %p148_p3 = scmp.ne.s32.totalorder %s1083_s16, %s1079_s15 }
   0x8   : > { %s1306_s23 = smov (%p31_p0, %s29_s23), 0  ;;  %p149_p5 = scmp.eq.s32.totalorder %s839_s22, 1 }
   0x9   : > { %p1168_p4 = por %p143_p2, %p142_p1  ;;  %s129_s26 = ssub.s32 %s1095_s19, %s1306_s23 }
   0xa   : > { %p842_p6 = scmp.ge.s32.totalorder %s1099_s20, 1  ;;  %p130_p7 = scmp.eq.s32.totalorder %s129_s26, 0 }
   0xb   : > { %p1175_p8 = por %p149_p5, %p148_p3  ;;  %p195_p9 = scmp.lt.s32.totalorder %s1099_s20, 3 }
   0xc   : > { %s1181_s28 = scalar_select %p130_p7, %s1087_s17, %s132_s24  }
   0xd   : > { %p196_p10 = pnand %p842_p6, %p195_p9 }
   0xe   : > { %p230_p11 = scmp.lt.s32.totalorder (!%p196_p10), %s1091_s18, 1  ;;  %s1188_s5 = sshll.u32 (!%p196_p10), %s1091_s18, 3 }
   0xf   : > { %199 = sbr.rel (%p196_p10) target bundleno = 438 (0x1b6), region = 36  ;;  %p236_p12 = scmp.lt.s32.totalorder (!%p196_p10), %s1188_s5, 15 }
  0x10   : > { %s748_s26 = scalar_lea.hbm (!%p196_p10), %s1297_s4, %s1188_s5 }
  0x14   : > { %v268_v0 = vld [vmem:[%s1295_s2] sm:$0xf]  ;;  %vm334_vm0 = vcmask 1043456   ;;  %v1101_v1 = vmov 0   ;;  %s1308_s18 = smov (!%p230_p11, %s1091_s18), 1  ;;  %vm309_vm1 = vcmask 64512   ;;  %v524_v9 = vlaneseq }
  0x15   : > { %1007 = vset.pattern.permute.xlu0 %v1101_v1  ;;  %v336_v2 = vsel %vm334_vm0, %v268_v0, 0  ;;  %s237_s6 = scalar_select %p236_p12, %s1188_s5, 15  ;;  %v940_v8 = vld [vmem:[%s1296_s3 + $0x38] sm:$0xff]  ;;  %v939_v11 = vld [vmem:[%s1296_s3 + $0x30] sm:$0xff]  ;;  %v938_v17 = vld [vmem:[%s1296_s3 + $0x28] sm:$0xff]  ;;  %vm720_vm3 = vcmask 1041409  }
  0x16   : > { %345 = vmatpush.bf16.msra.mxu0 %v336_v2  ;;  %941 = vmatpush.bf16.msra.mxu3 %v336_v2  ;;  %s844_s7 = sshll.u32 %s1308_s18, 3  ;;  %v1206_v10 = vshrl.u32 %v524_v9, 7  ;;  %v937_v18 = vld [vmem:[%s1296_s3 + $0x20] sm:$0xff]  ;;  %v936_v19 = vld [vmem:[%s1296_s3 + $0x18] sm:$0xff]  ;;  %v935_v20 = vld [vmem:[%s1296_s3 + $0x10] sm:$0xff]  ;;  %v525_v23 = vand.u32 127, %v524_v9 }
  0x17   : > { %s233_s10 = scalar_lea.vmem %s1293_s0, %s844_s7  ;;  %s924_s11 = sshll.u32 %s237_s6, 3  ;;  %475 = vmatpush.bf16.msra.mxu1 %v940_v8  ;;  %942 = vmatpush.bf16.msra.mxu2 %v940_v8  ;;  %v934_v21 = vld [vmem:[%s1296_s3 + $0x8] sm:$0xff]  ;;  %v933_v22 = vld [vmem:[%s1296_s3] sm:$0xff]  ;;  %v1102_v25 = vmov -1e+30   ;;  %vm722_vm4 = vcmask 1042434  }
  0x18   : > { %v529_v3 = vld [vmem:[%s233_s10] sm:$0xff]  ;;  %s243_s14 = scalar_lea.vmem %s1294_s1, %s924_s11  ;;  %v1212_v12 = vadd.s32 8, %v1206_v10  ;;  %s227_s18 = sand.u32 1, %s1083_s16   ;;  %vm724_vm5 = vcmask 1043459   ;;  %vm726_vm6 = vcmask 1044484   ;;  %vm728_vm7 = vcmask 1045509  }
  0x19   : > { %531 = vperm.xlu0 %1007, %v529_v3   ;;  %v925_v4 = vld [vmem:[%s243_s14] sm:$0xff]  ;;  %v926_v5 = vld [vmem:[%s243_s14 + $0x8] sm:$0xff]  ;;  %v927_v6 = vld [vmem:[%s243_s14 + $0x10] sm:$0xff]  ;;  %s1252_s21 = sshll.u32 %s227_s18, 3  ;;  %vm730_vm8 = vcmask 1046534   ;;  %vm732_vm9 = vcmask 1047559  }
  0x1a   : > { %880 = vmatmul.msk.bf16.vlgmr.msra.gmra.mxu0 %vm309_vm1, %v925_v4  ;;  %v930_v7 = vld [vmem:[%s243_s14 + $0x28] sm:$0xff]  ;;  %1009 = vset.pattern.permute.xlu1 %v1212_v12  ;;  %v928_v13 = vld [vmem:[%s243_s14 + $0x18] sm:$0xff]  ;;  %v931_v14 = vld [vmem:[%s243_s14 + $0x30] sm:$0xff]  ;;  %s229_s29 = scalar_lea.vmem [#allocation2], %s1252_s21  ;;  %s752_s6 = sshll.u32 %s748_s26, 4  ;;  %s753_s6 = int_to_ptr.hbm [resolvable:$true] %s752_s6 }
  0x1b   : > { %885 = vmatmul.msk.bf16.vlgmr.msra.gmra.mxu3 %vm309_vm1, %v930_v7  ;;  %476 = vmatpush.bf16.msra.mxu1 %v939_v11  ;;  %v929_v15 = vld [vmem:[%s243_s14 + $0x20] sm:$0xff]  ;;  %v932_v16 = vld [vmem:[%s243_s14 + $0x38] sm:$0xff]  ;;  %s750_s30 = sshll.u32 %s229_s29, 4  ;;  %s738_s5 = scalar_lea.sflag [#allocation3], %s227_s18  ;;  %s751_s30 = int_to_ptr.vmem [resolvable:$true] %s750_s30 }
  0x1c   : > { %1011 = vset.pattern.permute.xlu2 %v1212_v12  ;;  %943 = vmatpush.bf16.msra.mxu2 %v939_v11  ;;  %s1035_s7 = sshra.s32 %s753_s6, 4  ;;  %s1041_s11 = scalar_lea.hbm %s1297_s4, 16  ;;  %s1036_s7 = int_to_ptr.hbm [resolvable:$true] %s1035_s7 }
  0x1d   : > { %s1037_s8 = scalar_lea.hbm %s1036_s7, 8  ;;  %p1042_p2 = scmp.lt.s32.totalorder %s1036_s7, %s1297_s4 }
  0x1e   : > { %p1038_p13 = scmp.ne.s32.totalorder %s1036_s7, %s1037_s8  ;;  %p1043_p3 = scmp.lt.s32.totalorder %s1041_s11, %s1037_s8 }
  0x1f   : > { %477 = vmatpush.bf16.msra.mxu1 %v938_v17 }
  0x20   : > { %944 = vmatpush.bf16.msra.mxu2 %v938_v17  ;;  %p1039_p0 = pnand %p1038_p13, %p1168_p4  ;;  %p1044_p5 = por %p1043_p3, %p1042_p2 }
  0x21   : > { %1008 = vset.pattern.permute.xlu0 %v1206_v10 }
  0x22   : > { %p1040_p1 = pneg %p1039_p0 }
  0x23   : > { %478 = vmatpush.bf16.msra.mxu1 %v937_v18 }
  0x24   : > { %945 = vmatpush.bf16.msra.mxu2 %v937_v18  ;;  %p1045_p6 = pnand %p1044_p5, %p1040_p1 }
  0x27   : > { %479 = vmatpush.bf16.msra.mxu1 %v936_v19 }
  0x28   : > { %946 = vmatpush.bf16.msra.mxu2 %v936_v19 }
  0x2a   : > { %881 = vmatmul.msk.bf16.gmra.mxu0 %vm309_vm1, %v926_v5 }
  0x2b   : > { %886 = vmatmul.msk.bf16.gmra.mxu3 %vm309_vm1, %v931_v14  ;;  %480 = vmatpush.bf16.msra.mxu1 %v935_v20 }
  0x2c   : > { %947 = vmatpush.bf16.msra.mxu2 %v935_v20 }
  0x2f   : > { %481 = vmatpush.bf16.msra.mxu1 %v934_v21 }
  0x30   : > { %948 = vmatpush.bf16.msra.mxu2 %v934_v21 }
  0x33   : > { %482 = vmatpush.bf16.msra.mxu1 %v933_v22 }
  0x34   : > { %949 = vmatpush.bf16.msra.mxu2 %v933_v22 }
  0x3a   : > { %882 = vmatmul.msk.bf16.gmra.mxu0 %vm309_vm1, %v927_v6 }
  0x3b   : > { %887 = vmatmul.msk.bf16.gmra.mxu3 %vm309_vm1, %v932_v16 }
  0x4a   : > { %883 = vmatmul.msk.bf16.gmra.mxu0 %vm309_vm1, %v928_v13 }
  0x5a   : > { %884 = vmatmul.msk.bf16.gmra.mxu0 %vm309_vm1, %v929_v15 }
  0x8b   : > { %v532_v24 = vpop.permute.xlu0 %531 }
  0x8c   : > { %vm533_vm2 = vcmp.lt.s32.totalorder %v525_v23, %v532_v24 }
  0x8d   : > { %v534_v26 = vsel %vm533_vm2, 0.0, %v1102_v25 }
  0x8e   : > { %v535_v27 = vperm.slane %v534_v26, 0  ;;  %v548_v28 = vperm.slane %v534_v26, 1  ;;  %v561_v30 = vperm.slane %v534_v26, 2  ;;  %v574_v31 = vperm.slane %v534_v26, 3 }
  0x8f   : > { %v613_v41 = vperm.slane %v534_v26, 6  ;;  %v587_v42 = vperm.slane %v534_v26, 4  ;;  %v600_v44 = vperm.slane %v534_v26, 5  ;;  %v626_v50 = vperm.slane %v534_v26, 7 }
  0x90   : > { %546 = vperm.xlu1 %1009, %v535_v27   ;;  %559 = vperm.xlu2 %1011, %v548_v28  }
  0x91   : > { %540 = vperm.xlu0 %1008, %v535_v27  }
  0x97   : > { %v347_v29 = vpop.f32.mrf.mxu0 }
  0x98   : > { %1010 = vset.pattern.permute.xlu1 %v1206_v10  ;;  %1012 = vset.pattern.permute.xlu2 %v1206_v10  ;;  %v387_v33 = vmax.f32 %v347_v29, 0.0 }
  0x99   : > { %1014 = vset.pattern.permute.xlu0 %v1212_v12 }
  0x9e   : > { %v372_v56 = vpop.f32.mrf.mxu3 }
  0x9f   : > { %v349_v32 = vpop.f32.mrf.mxu0  ;;  %v397_v63 = vmax.f32 %v372_v56, 0.0 }
  0xa0   : > { %553 = vperm.xlu1 %1010, %v548_v28   ;;  %566 = vperm.xlu2 %1012, %v561_v30   ;;  %v388_v34 = vmax.f32 %v349_v32, 0.0 }
  0xa1   : > { %585 = vperm.xlu0 %1014, %v574_v31  }
  0xa2   : > { %v403_v35 = vpack.c.bf16 %v388_v34, %v387_v33 }
  0xa4   : > { %483 = vmatmul.bf16.vlgmr.msra.gmra.mxu1 %v403_v35 }
  0xa6   : > { %v374_v61 = vpop.f32.mrf.mxu3 }
  0xa7   : > { %v352_v36 = vpop.f32.mrf.mxu0  ;;  %v398_v0 = vmax.f32 %v374_v61, 0.0 }
  0xa8   : > { %1013 = vset.pattern.permute.xlu1 %v1212_v12  ;;  %579 = vperm.xlu2 %1012, %v574_v31   ;;  %v389_v38 = vmax.f32 %v352_v36, 0.0 }
  0xa9   : > { %1017 = vset.pattern.permute.xlu0 %v1206_v10  ;;  %v408_v1 = vpack.c.bf16 %v398_v0, %v397_v63 }
  0xae   : > { %v377_v62 = vpop.f32.mrf.mxu3 }
  0xaf   : > { %v354_v37 = vpop.f32.mrf.mxu0  ;;  %v399_v3 = vmax.f32 %v377_v62, 0.0 }
  0xb0   : > { %572 = vperm.xlu1 %1013, %v561_v30   ;;  %1016 = vset.pattern.permute.xlu2 %v1212_v12  ;;  %v390_v39 = vmax.f32 %v354_v37, 0.0 }
  0xb1   : > { %618 = vperm.xlu0 %1017, %v613_v41  }
  0xb2   : > { %v404_v40 = vpack.c.bf16 %v390_v39, %v389_v38 }
  0xb4   : > { %488 = vmatmul.bf16.gmra.mxu1 %v404_v40 }
  0xb6   : > { %v379_v2 = vpop.f32.mrf.mxu3 }
  0xb7   : > { %v357_v43 = vpop.f32.mrf.mxu0  ;;  %v400_v4 = vmax.f32 %v379_v2, 0.0 }
  0xb8   : > { %1015 = vset.pattern.permute.xlu1 %v1206_v10  ;;  %598 = vperm.xlu2 %1016, %v587_v42   ;;  %v391_v46 = vmax.f32 %v357_v43, 0.0 }
  0xb9   : > { %1020 = vset.pattern.permute.xlu0 %v1212_v12  ;;  %v409_v6 = vpack.c.bf16 %v400_v4, %v399_v3 }
  0xbe   : > { %v382_v5 = vpop.f32.mrf.mxu3 }
  0xbf   : > { %v359_v45 = vpop.f32.mrf.mxu0  ;;  %v401_v8 = vmax.f32 %v382_v5, 0.0 }
  0xc0   : > { %592 = vperm.xlu1 %1015, %v587_v42   ;;  %611 = vperm.xlu2 %1016, %v600_v44   ;;  %v392_v47 = vmax.f32 %v359_v45, 0.0 }
  0xc2   : > { %v405_v48 = vpack.c.bf16 %v392_v47, %v391_v46 }
  0xc4   : > { %493 = vmatmul.bf16.gmra.mxu1 %v405_v48 }
  0xc6   : > { %v384_v7 = vpop.f32.mrf.mxu3 }
  0xc7   : > { %v362_v49 = vpop.f32.mrf.mxu0  ;;  %v402_v9 = vmax.f32 %v384_v7, 0.0 }
  0xc8   : > { %605 = vperm.xlu1 %1015, %v600_v44   ;;  %1019 = vset.pattern.permute.xlu2 %v1206_v10  ;;  %v393_v52 = vmax.f32 %v362_v49, 0.0 }
  0xc9   : > { %v410_v10 = vpack.c.bf16 %v402_v9, %v401_v8 }
  0xcf   : > { %v364_v51 = vpop.f32.mrf.mxu0 }
  0xd0   : > { %1018 = vset.pattern.permute.xlu1 %v1212_v12  ;;  %631 = vperm.xlu2 %1019, %v626_v50   ;;  %v394_v53 = vmax.f32 %v364_v51, 0.0 }
  0xd2   : > { %v406_v54 = vpack.c.bf16 %v394_v53, %v393_v52 }
  0xd4   : > { %498 = vmatmul.bf16.gmra.mxu1 %v406_v54 }
  0xd7   : > { %v367_v55 = vpop.f32.mrf.mxu0 }
  0xd8   : > { %624 = vperm.xlu1 %1018, %v613_v41   ;;  %v395_v58 = vmax.f32 %v367_v55, 0.0 }
  0xdf   : > { %v369_v57 = vpop.f32.mrf.mxu0 }
  0xe0   : > { %637 = vperm.xlu1 %1018, %v626_v50   ;;  %v396_v59 = vmax.f32 %v369_v57, 0.0 }
  0xe2   : > { %v407_v60 = vpack.c.bf16 %v396_v59, %v395_v58 }
  0xe4   : > { %503 = vmatmul.bf16.vlgmr.msra.gmra.mxu2 %v407_v60 }
  0xea   : > { %v560_v16 = vpop.permute.xlu2 %559 }
  0xf4   : > { %508 = vmatmul.bf16.gmra.mxu2 %v408_v1 }
  0xfa   : > { %v567_v20 = vpop.permute.xlu2 %566 }
 0x102   : > { %v547_v14 = vpop.permute.xlu1 %546  ;;  %v580_v25 = vpop.permute.xlu2 %579 }
 0x103   : > { %v541_v27 = vpop.permute.xlu0 %540 }
 0x104   : > { %513 = vmatmul.bf16.gmra.mxu2 %v409_v6 }
 0x112   : > { %v554_v17 = vpop.permute.xlu1 %553  ;;  %v599_v30 = vpop.permute.xlu2 %598 }
 0x113   : > { %v586_v32 = vpop.permute.xlu0 %585 }
 0x114   : > { %518 = vmatmul.bf16.gmra.mxu2 %v410_v10 }
 0x11a   : > { %v612_v40 = vpop.permute.xlu2 %611 }
 0x121   : > { %v484_v11 = vpop.f32.mrf.mxu1 }
 0x122   : > { %v573_v22 = vpop.permute.xlu1 %572  ;;  %v639_v43 = vadd.f32 %v541_v27, %v484_v11 }
 0x123   : > { %v619_v52 = vpop.permute.xlu0 %618 }
 0x129   : > { %v486_v12 = vpop.f32.mrf.mxu1 }
 0x12a   : > { %v640_v37 = vadd.f32 %v547_v14, %v486_v12 }
 0x12c   : > { %v656_v51 = vmax.f32 %v639_v43, %v640_v37 }
 0x12e   : > { %v657_v62 = vrot.slane %v656_v51, 4 }
 0x130   : > { %v658_v6 = vmax.f32 %v656_v51, %v657_v62 }
 0x131   : > { %v489_v13 = vpop.f32.mrf.mxu1 }
 0x132   : > { %v593_v26 = vpop.permute.xlu1 %592  ;;  %v641_v38 = vadd.f32 %v554_v17, %v489_v13  ;;  %v659_v13 = vrot.slane %v658_v6, 2 }
 0x139   : > { %v491_v15 = vpop.f32.mrf.mxu1 }
 0x13a   : > { %v606_v31 = vpop.permute.xlu1 %605  ;;  %v642_v35 = vadd.f32 %v560_v16, %v491_v15  ;;  %v632_v16 = vpop.permute.xlu2 %631 }
 0x13c   : > { %v663_v44 = vmax.f32 %v641_v38, %v642_v35 }
 0x13e   : > { %v664_v58 = vrot.slane %v663_v44, 4 }
 0x140   : > { %v665_v1 = vmax.f32 %v663_v44, %v664_v58 }
 0x141   : > { %v494_v19 = vpop.f32.mrf.mxu1 }
 0x142   : > { %v643_v41 = vadd.f32 %v567_v20, %v494_v19  ;;  %v666_v9 = vrot.slane %v665_v1, 2 }
 0x144   : > { %v667_v17 = vmax.f32 %v665_v1, %v666_v9 }
 0x149   : > { %v496_v23 = vpop.f32.mrf.mxu1 }
 0x14a   : > { %v644_v36 = vadd.f32 %v573_v22, %v496_v23  ;;  %v625_v47 = vpop.permute.xlu1 %624  ;;  %v660_v23 = vmax.f32 %v658_v6, %v659_v13 }
 0x14c   : > { %v670_v48 = vmax.f32 %v643_v41, %v644_v36 }
 0x14e   : > { %v671_v60 = vrot.slane %v670_v48, 4 }
 0x150   : > { %v672_v3 = vmax.f32 %v670_v48, %v671_v60 }
 0x151   : > { %v499_v28 = vpop.f32.mrf.mxu1 }
 0x152   : > { %v645_v45 = vadd.f32 %v580_v25, %v499_v28  ;;  %v673_v11 = vrot.slane %v672_v3, 2  ;;  %v638_v20 = vpop.permute.xlu1 %637  ;;  %v668_v28 = vrot.slane %v667_v17, 1 }
 0x154   : > { %v674_v19 = vmax.f32 %v672_v3, %v673_v11  ;;  %v669_v37 = vmax.f32 %v667_v17, %v668_v28 }
 0x159   : > { %v501_v34 = vpop.f32.mrf.mxu1 }
 0x15a   : > { %v646_v39 = vadd.f32 %v586_v32, %v501_v34 }
 0x15c   : > { %v677_v53 = vmax.f32 %v645_v45, %v646_v39 }
 0x15e   : > { %v678_v63 = vrot.slane %v677_v53, 4 }
 0x160   : > { %v679_v7 = vmax.f32 %v677_v53, %v678_v63 }
 0x162   : > { %v680_v14 = vrot.slane %v679_v7, 2 }
 0x167   : > { %v504_v18 = vpop.f32.mrf.mxu2 }
 0x168   : > { %v647_v49 = vadd.f32 %v593_v26, %v504_v18 }
 0x16f   : > { %v506_v21 = vpop.f32.mrf.mxu2 }
 0x170   : > { %v648_v42 = vadd.f32 %v599_v30, %v506_v21 }
 0x172   : > { %v684_v56 = vmax.f32 %v647_v49, %v648_v42 }
 0x174   : > { %v685_v0 = vrot.slane %v684_v56, 4 }
 0x176   : > { %v686_v8 = vmax.f32 %v684_v56, %v685_v0 }
 0x177   : > { %v509_v24 = vpop.f32.mrf.mxu2 }
 0x178   : > { %v649_v54 = vadd.f32 %v606_v31, %v509_v24  ;;  %v687_v15 = vrot.slane %v686_v8, 2  ;;  %v681_v24 = vmax.f32 %v679_v7, %v680_v14  ;;  %v675_v31 = vrot.slane %v674_v19, 1 }
 0x17a   : > { %v688_v27 = vmax.f32 %v686_v8, %v687_v15  ;;  %v682_v34 = vrot.slane %v681_v24, 1 }
 0x17c   : > { %v689_v36 = vrot.slane %v688_v27, 1  ;;  %v683_v43 = vmax.f32 %v681_v24, %v682_v34 }
 0x17e   : > { %v690_v45 = vmax.f32 %v688_v27, %v689_v36 }
 0x17f   : > { %v511_v29 = vpop.f32.mrf.mxu2 }
 0x180   : > { %v650_v46 = vadd.f32 %v612_v40, %v511_v29  ;;  %v676_v40 = vmax.f32 %v674_v19, %v675_v31 }
 0x182   : > { %v691_v59 = vmax.f32 %v649_v54, %v650_v46 }
 0x184   : > { %v692_v2 = vrot.slane %v691_v59, 4 }
 0x186   : > { %v693_v10 = vmax.f32 %v691_v59, %v692_v2 }
 0x187   : > { %v514_v33 = vpop.f32.mrf.mxu2 }
 0x188   : > { %v651_v57 = vadd.f32 %v619_v52, %v514_v33  ;;  %v694_v18 = vrot.slane %v693_v10, 2  ;;  %v661_v33 = vrot.slane %v660_v23, 1 }
 0x18a   : > { %v695_v29 = vmax.f32 %v693_v10, %v694_v18  ;;  %v662_v42 = vmax.f32 %v660_v23, %v661_v33 }
 0x18c   : > { %v696_v38 = vrot.slane %v695_v29, 1  ;;  %v721_v46 = vsel %vm720_vm3, %v669_v37, %v662_v42 }
 0x18d   : > { %v723_v49 = vsel %vm722_vm4, %v676_v40, %v721_v46 }
 0x18e   : > { %v725_v51 = vsel %vm724_vm5, %v683_v43, %v723_v49 }
 0x18f   : > { %v516_v50 = vpop.f32.mrf.mxu2  ;;  %v727_v53 = vsel %vm726_vm6, %v690_v45, %v725_v51 }
 0x190   : > { %v652_v55 = vadd.f32 %v625_v47, %v516_v50  ;;  %v697_v47 = vmax.f32 %v695_v29, %v696_v38 }
 0x192   : > { %v698_v61 = vmax.f32 %v651_v57, %v652_v55  ;;  %v729_v54 = vsel %vm728_vm7, %v697_v47, %v727_v53 }
 0x194   : > { %v699_v4 = vrot.slane %v698_v61, 4 }
 0x196   : > { %v700_v12 = vmax.f32 %v698_v61, %v699_v4 }
 0x197   : > { %v519_v5 = vpop.f32.mrf.mxu2 }
 0x198   : > { %v701_v21 = vrot.slane %v700_v12, 2  ;;  %v653_v25 = vadd.f32 %v632_v16, %v519_v5 }
 0x19a   : > { %v702_v32 = vmax.f32 %v700_v12, %v701_v21 }
 0x19c   : > { %v703_v41 = vrot.slane %v702_v32, 1 }
 0x19e   : > { %v704_v50 = vmax.f32 %v702_v32, %v703_v41 }
 0x19f   : > { %v521_v22 = vpop.f32.mrf.mxu2 }
 0x1a0   : > { %v654_v26 = vadd.f32 %v638_v20, %v521_v22  ;;  %v731_v56 = vsel %vm730_vm8, %v704_v50, %v729_v54 }
 0x1a2   : > { %v705_v30 = vmax.f32 %v653_v25, %v654_v26 }
 0x1a4   : > { %v706_v35 = vrot.slane %v705_v30, 4 }
 0x1a6   : > { %v707_v39 = vmax.f32 %v705_v30, %v706_v35 }
 0x1a8   : > { %v708_v44 = vrot.slane %v707_v39, 2 }
 0x1aa   : > { %v709_v48 = vmax.f32 %v707_v39, %v708_v44 }
 0x1ac   : > { %v710_v52 = vrot.slane %v709_v48, 1 }
 0x1ae   : > { %v711_v55 = vmax.f32 %v709_v48, %v710_v52 }
 0x1b0   : > { %v733_v57 = vsel %vm732_vm9, %v711_v55, %v731_v56 }
 0x1b1   : > { %v735_v58 = vmax.f32 %v733_v57, -1e+30 }
 0x1b3   : > { %736 = vst [vmem:[%s229_s29] sm:$0xff] %v735_v58 }
 0x1b4   : > { %1048 = shalt.err (!%p1045_p6)
}
 0x1b5   : > { %950 = dma.vmem_to_hbm [thread:$0]  (%p1168_p4), %s751_s30, 128, %s753_s6, %s738_s5  }
 0x1b6 PF: > { %p956_p7 = scmp.ge.s32.totalorder %s1099_s20, 2  ;;  %s764_s14 = sand.u32 1, %s1079_s15  }
 0x1b7   : > { %s765_s18 = scalar_lea.sflag [#allocation3], %s764_s14 }
 0x1b8   : > { %p953_p9 = pnand %p956_p7, %p1175_p8 }
 0x1ba   : > { %p954_p10 = pneg %p953_p9 }
 0x1bc   : > { %1074 = dma.done.wait (%p954_p10), %s765_s18, 128  }
 0x1bd   : > { %1076 = vsyncadd (%p954_p10), %s765_s18, 4294967168  ;;  %s17_s20 = sadd.s32 1, %s1099_s20   ;;  %s1300_s15 = smov %s1083_s16 }
 0x1be   : > { %p14_p11 = scmp.ge.s32.totalorder %s17_s20, 4   ;;  %s1301_s16 = smov %s1087_s17 }
 0x1bf   : > { %s1302_s17 = smov %s1181_s28  ;;  %s1303_s18 = smov %s1095_s19 }
 0x1c0   : > { %s1304_s19 = smov %s1306_s23  ;;  %16 = sbr.rel (!%p14_p11) target bundleno = 4 (0x4), region = 78 }
 0x1c5   :  { %771 = vsyncpa [#allocation3], 1 }
 0x1c6   :  { %773 = vsyncpa [#allocation3 + $0x1], 1 }

</bundles_post_ra>
